<compile_context>
chip_gen: v7x
topology: tpu7x:2x2x1
jax: 0.10.0
libtpu: 0.0.40
codegen_flags: <defaults>
</compile_context>

<pallas_src>
import functools

import jax
import jax.numpy as jnp
import numpy as np
from jax import lax
from jax.experimental import pallas as pl
from jax.experimental.pallas import tpu as pltpu


def _round_up(x: int, m: int) -> int:
    return (x + m - 1) // m * m


def _vq_kernel(e_ref, w_ref, wsqh_ref, quant_ref, idx_ref, *, alpha: float):
    """One tile of encode rows vs. the (lane-padded) resident codebook.

    e_ref:     (TN, D)            encode rows (TN is a multiple of 128)
    w_ref:     (Kp, D)            codebook, K zero-padded up to a multiple of 128
    wsqh_ref:  (1,  Kp)           0.5 * ||w_k||^2 (+inf on padded rows -> never win)
    quant_ref: (TN, D)            ste output (== residual forward value)
    idx_ref:   (1, TN//128, 128)  nearest-code index (int32), lane-dense
    """
    e = e_ref[...].astype(jnp.float32)            # (TN, D)
    w = w_ref[...].astype(jnp.float32)            # (Kp, D)
    w_sq_half = wsqh_ref[...]                     # (1,  Kp)
    tn = e.shape[0]
    kp = w.shape[0]
    xs = tn // 128

    # cross = e @ W^T without materializing W^T: contract D of both operands on MXU.
    cross = lax.dot_general(
        e, w,
        dimension_numbers=(((1,), (1,)), ((), ())),
        preferred_element_type=jnp.float32)       # (TN, Kp)

    # Only argmax consumes the logits, so ||e||^2 (constant per row) is dropped and
    # the whole expression is scaled by 1/2:
    #   argmin(||e||^2 - 2*cross + ||w||^2) == argmax(cross - ||w||^2 / 2)
    logits = cross - w_sq_half                    # (TN, Kp)

    # First-occurrence argmax over the codebook axis, done once in the lane-dense
    # (xs, 128, Kp) layout so the index result is already shaped for its store.
    logits3 = logits.reshape(xs, 128, kp)
    col3 = lax.broadcasted_iota(jnp.int32, (xs, 128, kp), 2)       # (xs, 128, Kp)
    maxv = jnp.max(logits3, axis=-1, keepdims=True)                # (xs, 128, 1)
    mcol = jnp.where(logits3 == maxv, col3, kp)                    # (xs, 128, Kp)
    idx3 = jnp.min(mcol, axis=-1, keepdims=True)                   # (xs, 128, 1)

    # quant = W[idx] as a one-hot matmul (exact codebook rows, stays on the MXU).
    onehot = (col3 == idx3).astype(jnp.float32).reshape(tn, kp)    # (TN, Kp)
    quant = jnp.dot(onehot, w, preferred_element_type=jnp.float32) # (TN, D)

    # residual / straight-through forward value
    if alpha > 0.0:
        residual = e * alpha + quant * (1.0 - alpha)
    else:
        residual = quant
    quant_ref[...] = residual.astype(quant_ref.dtype)

    # Lane-dense index store: whole (xs, 128) slab at once.
    idx_ref[0] = idx3[..., 0]


def vq_forward(encode, codebook, *, alpha: float = 0.0, tile_n: int = 1024):
    """Pallas implementation of VQ.forward (returns (ste, zidx)).

    encode:   (B, C, D) float32
    codebook: (K, D)    float32   (== Codebook.templat.weight)
    tile_n:   max rows per grid step; multiple of 128.
    """
    b, c, d = encode.shape
    n = b * c
    k = codebook.shape[0]
    assert tile_n % 128 == 0, "tile_n must be a multiple of 128"

    # Tile selection: big tiles amortize the ~0.35us per-grid-step overhead, but keep
    # >= 2 tiles when there is enough work so the "parallel" axis can shard across
    # v7x's two TensorCores.
    n_rounded = _round_up(n, 128)
    if n_rounded >= 256:
        half = _round_up((n + 1) // 2, 128)
    else:
        half = n_rounded
    tile_n_eff = max(128, min(tile_n, half))
    num_tiles = pl.cdiv(n, tile_n_eff)
    xs = tile_n_eff // 128

    # Lane-pad the codebook so every (TN, K) temporary and both MXU operands are
    # lane-dense. Padded rows: zero weights + 0.5||w||^2 = +inf -> logits = -inf.
    kp = _round_up(k, 128)
    w32 = codebook.astype(jnp.float32)
    w_sq_half = 0.5 * jnp.sum(w32 * w32, axis=-1)                   # (K,)
    if kp != k:
        w32 = jnp.pad(w32, ((0, kp - k), (0, 0)))
        w_sq_half = jnp.pad(w_sq_half, (0, kp - k),
                            constant_values=jnp.inf)
    w_sq_half = w_sq_half.reshape(1, kp)

    # No row padding: the ragged last block is handled by Pallas edge masking
    # (garbage edge rows only produce outputs that are masked / sliced off).
    e_flat = encode.reshape(n, d)

    kernel = functools.partial(_vq_kernel, alpha=float(alpha))

    cost = pl.CostEstimate(
        flops=4 * n * kp * d,                      # two (N, Kp, D) matmuls
        transcendentals=0,
        bytes_accessed=(2 * n * d * 4) + (kp * d * 4) + (kp * 4)
                       + (num_tiles * tile_n_eff * 4),
    )

    quant, idx = pl.pallas_call(
        kernel,
        out_shape=(
            jax.ShapeDtypeStruct((n, d), encode.dtype),
            jax.ShapeDtypeStruct((num_tiles, xs, 128), jnp.int32),
        ),
        grid=(num_tiles,),
        in_specs=[
            pl.BlockSpec((tile_n_eff, d), lambda i: (i, 0)),   # encode rows, tiled
            pl.BlockSpec((kp, d), lambda i: (0, 0)),           # codebook, resident
            pl.BlockSpec((1, kp), lambda i: (0, 0)),           # 0.5*||w||^2, resident
        ],
        out_specs=(
            pl.BlockSpec((tile_n_eff, d), lambda i: (i, 0)),
            pl.BlockSpec((1, xs, 128), lambda i: (i, 0, 0)),
        ),
        compiler_params=pltpu.CompilerParams(
            dimension_semantics=("parallel",),
            vmem_limit_bytes=32 * 1024 * 1024,
        ),
        cost_estimate=cost,
    )(e_flat, w32, w_sq_half)

    ste = quant.reshape(b, c, d)
    # idx is tiny (4 B/row): the padded-tail slice here is negligible.
    zidx = idx.reshape(num_tiles * tile_n_eff)[:n].reshape(b, c)   # int32 (PT: int64)
    return ste, zidx


def _reference(encode, codebook, alpha=0.0):
    """Pure-JAX reference for the same forward pass."""
    b, c, d = encode.shape
    e = encode.reshape(-1, d).astype(jnp.float32)
    w = codebook.astype(jnp.float32)
    dist = (jnp.sum(e * e, -1, keepdims=True)
            - 2.0 * e @ w.T
            + jnp.sum(w * w, -1, keepdims=True).T)
    idx = jnp.argmax(-dist, axis=-1)
    quant = w[idx]
    residual = e * alpha + quant * (1.0 - alpha) if alpha > 0 else quant
    return residual.reshape(b, c, d), idx.reshape(b, c)


if __name__ == "__main__":
    # Module hyper-params (deterministic, in-script init — no checkpoint load)
    codebook_size = 64     # num_embed
    embed_dim = 128        # embed_dim

    key = jax.random.PRNGKey(0)
    k_enc, k_code, k_enc2 = jax.random.split(key, 3)

    # nn.Embedding weight init: uniform_(-1/num_embed, 1/num_embed)
    codebook = jax.random.uniform(
        k_code, (codebook_size, embed_dim), dtype=jnp.float32,
        minval=-1.0 / codebook_size, maxval=1.0 / codebook_size)

    # --- check 1: tiny shape (single partial block, n < tile), alpha = 0 ---
    b, c = 2, 8
    encode = jax.random.normal(k_enc, (b, c, embed_dim), dtype=jnp.float32)
    ste, zidx = vq_forward(encode, codebook, alpha=0.0)
    jax.block_until_ready((ste, zidx))
    ste_ref, zidx_ref = _reference(encode, codebook, alpha=0.0)
    np.testing.assert_array_equal(np.asarray(zidx), np.asarray(zidx_ref))
    np.testing.assert_allclose(np.asarray(ste), np.asarray(ste_ref),
                               rtol=1e-5, atol=1e-5)

    # --- check 2: row count not a multiple of the tile (exercises the ragged,
    # pad-free edge block) and a >=2-step grid (keeps both v7x TCs busy); alpha>0 ---
    b2, c2 = 3, 100
    encode2 = jax.random.normal(k_enc2, (b2, c2, embed_dim), dtype=jnp.float32)
    ste2, zidx2 = vq_forward(encode2, codebook, alpha=0.25)
    jax.block_until_ready((ste2, zidx2))
    ste2_ref, zidx2_ref = _reference(encode2, codebook, alpha=0.25)
    np.testing.assert_array_equal(np.asarray(zidx2), np.asarray(zidx2_ref))
    np.testing.assert_allclose(np.asarray(ste2), np.asarray(ste2_ref),
                               rtol=1e-5, atol=1e-5)

    # TODO(synk): training-time paths (gumbel-softmax sampling, kmeans cluster(),
    # replace(), latent ring-buffer update) are stateful/host-driven and are not
    # part of the forward hot path; only the inference forward is implemented.

    print("KERNEL_OK")
</pallas_src>

<mosaic_0001>
module attributes {stable_mosaic.version = 11 : i64} {
  func.func @_vq_kernel(%arg0: i32, %arg1: memref<128x128xf32, #tpu.memory_space<vmem>>, %arg2: memref<128x128xf32, #tpu.memory_space<vmem>>, %arg3: memref<1x128xf32, #tpu.memory_space<vmem>>, %arg4: memref<128x128xf32, #tpu.memory_space<vmem>>, %arg5: memref<1x1x128xi32, #tpu.memory_space<vmem>>) attributes {dimension_semantics = [#tpu.dimension_semantics<parallel>], iteration_bounds = array<i64: 1>, scalar_prefetch = 0 : i64, scratch_operands = 0 : i64, tpu.core_type = #tpu.core_type<tc>, window_params = [{transform_indices = @transform_0, window_bounds = array<i64: 128, 128>}, {pipeline_mode = #tpu.pipeline_mode<synchronous>, transform_indices = @transform_1, window_bounds = array<i64: 128, 128>}, {pipeline_mode = #tpu.pipeline_mode<synchronous>, transform_indices = @transform_2, window_bounds = array<i64: 1, 128>}, {transform_indices = @transform_3, window_bounds = array<i64: 128, 128>}, {transform_indices = @transform_4, window_bounds = array<i64: 1, 1, 128>}]} {
    %c0 = arith.constant 0 : index
    %c0_0 = arith.constant 0 : index
    %0 = vector.load %arg1[%c0, %c0_0] : memref<128x128xf32, #tpu.memory_space<vmem>>, vector<128x128xf32>
    %c0_1 = arith.constant 0 : index
    %c0_2 = arith.constant 0 : index
    %1 = vector.load %arg2[%c0_1, %c0_2] : memref<128x128xf32, #tpu.memory_space<vmem>>, vector<128x128xf32>
    %c0_3 = arith.constant 0 : index
    %c0_4 = arith.constant 0 : index
    %2 = vector.load %arg3[%c0_3, %c0_4] : memref<1x128xf32, #tpu.memory_space<vmem>>, vector<1x128xf32>
    %cst = arith.constant dense<0.000000e+00> : vector<128x128xf32>
    %3 = tpu.matmul %0, %1, %cst {dimension_numbers = #tpu.dot_dimension_numbers<[1], [1], [0], [0], [0, 0, 1, 0], [], []>} : vector<128x128xf32>, vector<128x128xf32>, vector<128x128xf32> -> vector<128x128xf32>
    %4 = vector.broadcast %2 : vector<1x128xf32> to vector<128x128xf32>
    %5 = arith.subf %3, %4 : vector<128x128xf32>
    %6 = vector.shape_cast %5 : vector<128x128xf32> to vector<1x128x128xf32>
    %7 = tpu.iota {dimensions = array<i32: 2>} : vector<1x128x128xi32>
    %cst_5 = arith.constant dense<0xFF800000> : vector<1x128xf32>
    %8 = vector.multi_reduction <maximumf>, %6, %cst_5 [2] : vector<1x128x128xf32> to vector<1x128xf32>
    %9 = vector.shape_cast %8 : vector<1x128xf32> to vector<1x128x1xf32>
    %10 = vector.broadcast %9 : vector<1x128x1xf32> to vector<1x128x128xf32>
    %11 = arith.cmpf oeq, %6, %10 : vector<1x128x128xf32>
    %c128_i32 = arith.constant 128 : i32
    %12 = vector.broadcast %c128_i32 : i32 to vector<1x128x128xi32>
    %13 = arith.select %11, %7, %12 : vector<1x128x128xi1>, vector<1x128x128xi32>
    %cst_6 = arith.constant dense<2147483647> : vector<1x128xi32>
    %14 = vector.multi_reduction <minsi>, %13, %cst_6 [2] : vector<1x128x128xi32> to vector<1x128xi32>
    %15 = vector.shape_cast %14 : vector<1x128xi32> to vector<1x128x1xi32>
    %16 = vector.broadcast %15 : vector<1x128x1xi32> to vector<1x128x128xi32>
    %17 = arith.cmpi eq, %7, %16 : vector<1x128x128xi32>
    %18 = arith.extui %17 : vector<1x128x128xi1> to vector<1x128x128xi32>
    %19 = arith.sitofp %18 : vector<1x128x128xi32> to vector<1x128x128xf32>
    %20 = vector.shape_cast %19 : vector<1x128x128xf32> to vector<128x128xf32>
    %cst_7 = arith.constant dense<0.000000e+00> : vector<128x128xf32>
    %21 = tpu.matmul %20, %1, %cst_7 {dimension_numbers = #tpu.dot_dimension_numbers<[1], [0], [0], [1], [0, 0, 1, 1], [], []>} : vector<128x128xf32>, vector<128x128xf32>, vector<128x128xf32> -> vector<128x128xf32>
    %c0_8 = arith.constant 0 : index
    %c0_9 = arith.constant 0 : index
    %22 = vector.load %arg4[%c0_8, %c0_9] : memref<128x128xf32, #tpu.memory_space<vmem>>, vector<128x128xf32>
    tpu.vector_store %arg4[%c0_8, %c0_9], %21 {strides = array<i32>} : memref<128x128xf32, #tpu.memory_space<vmem>>, vector<128x128xf32>,
    %23 = vector.shape_cast %15 : vector<1x128x1xi32> to vector<1x128xi32>
    %c0_10 = arith.constant 0 : index
    %c0_11 = arith.constant 0 : index
    %c0_12 = arith.constant 0 : index
    %24 = vector.load %arg5[%c0_10, %c0_11, %c0_12] : memref<1x1x128xi32, #tpu.memory_space<vmem>>, vector<1x1x128xi32>
    %25 = vector.shape_cast %24 : vector<1x1x128xi32> to vector<1x128xi32>
    %26 = vector.shape_cast %23 : vector<1x128xi32> to vector<1x1x128xi32>
    tpu.vector_store %arg5[%c0_10, %c0_11, %c0_12], %26 {strides = array<i32>} : memref<1x1x128xi32, #tpu.memory_space<vmem>>, vector<1x1x128xi32>,
    return
  }
  func.func @transform_0(%arg0: i32) -> (i32, i32) {
    %c0_i32 = arith.constant 0 : i32
    %c0_i32_0 = arith.constant 0 : i32
    return %arg0, %c0_i32 : i32, i32
  }
  func.func @transform_1(%arg0: i32) -> (i32, i32) {
    %c0_i32 = arith.constant 0 : i32
    %c0_i32_0 = arith.constant 0 : i32
    %c0_i32_1 = arith.constant 0 : i32
    return %c0_i32, %c0_i32_0 : i32, i32
  }
  func.func @transform_2(%arg0: i32) -> (i32, i32) {
    %c0_i32 = arith.constant 0 : i32
    %c0_i32_0 = arith.constant 0 : i32
    %c0_i32_1 = arith.constant 0 : i32
    return %c0_i32, %c0_i32_0 : i32, i32
  }
  func.func @transform_3(%arg0: i32) -> (i32, i32) {
    %c0_i32 = arith.constant 0 : i32
    %c0_i32_0 = arith.constant 0 : i32
    return %arg0, %c0_i32 : i32, i32
  }
  func.func @transform_4(%arg0: i32) -> (i32, i32, i32) {
    %c0_i32 = arith.constant 0 : i32
    %c0_i32_0 = arith.constant 0 : i32
    %c0_i32_1 = arith.constant 0 : i32
    return %arg0, %c0_i32, %c0_i32_0 : i32, i32, i32
  }
}

</mosaic_0001>

<bundles_post_ra>
// kernel: tpu_custom_call.1
= control target key start
LH: loop header
LB: loop body
LE: loop exit
PB: predicated region body
PF: predicated region fallthrough
CT: control target
= control target key end

     0   :  { %10 = vsyncpa [#allocation3], 0  ;;  %s1718_s0 = inlined_call_operand.hbm [shape: f32[16,128], index: 0, kind: input, shape index: {}]   ;;  %s1719_s1 = inlined_call_operand.hbm [shape: f32[128,128], index: 1, kind: input, shape index: {}]   ;;  %s1720_s2 = inlined_call_operand.vmem [shape: f32[1,128], index: 2, kind: input, shape index: {}]   ;;  %s1721_s3 = inlined_call_operand.hbm [shape: f32[16,128], index: 3, kind: output, shape index: {0}]   ;;  %s1722_s4 = inlined_call_operand.hbm [shape: s32[1,1,128], index: 4, kind: output, shape index: {1}]  }
   0x1   :  { %11 = vsyncpa [#allocation6], 0 }
   0x2   :  { %12 = vsyncpa [#allocation4], 0 }
   0x3   :  { %13 = vsyncpa [#allocation9], 0 }
   0x4   :  { %18 = vsyncadd [#allocation3], 1792  ;;  %s1263_s15 = smov [#allocation2]   ;;  %s1167_s19 = scalar_lea.hbm %s1718_s0, 256 }
   0x5   :  { %s19_s16 = sshll.u32 %s1263_s15, 4  ;;  %p1168_p0 = scmp.ne.s32.totalorder %s1718_s0, %s1167_s19  ;;  %s20_s16 = int_to_ptr.vmem [resolvable:$true] %s19_s16 }
   0x6   :  { %p1171_p1 = scmp.lt.u32.totalorder %s1167_s19, %s1718_s0 }
   0x8   :  { %p1173_p2 = pnand %p1171_p1, %p1168_p0 }
   0xa   :  { %1176 = shalt.err (!%p1173_p2)
}
   0xb   :  { %s1177_s24 = scalar_lea.vmem %s20_s16, 256  ;;  %s1181_s25 = scalar_lea.vmem %s20_s16, 2048 }
   0xc   :  { %p1178_p3 = scmp.ne.s32.totalorder %s20_s16, %s1177_s24  ;;  %p1182_p4 = scmp.lt.s32.totalorder %s20_s16, %s20_s16 }
   0xd   :  { %p1183_p5 = scmp.lt.s32.totalorder %s1181_s25, %s1177_s24 }
   0xf   :  { %p1184_p6 = por %p1183_p5, %p1182_p4 }
  0x11   :  { %p1185_p7 = pnand %p1184_p6, %p1178_p3 }
  0x13   :  { %1188 = shalt.err (!%p1185_p7)
}
  0x14   :  { %s1264_s26 = smov 128   ;;  %s1265_s27 = smov 8  }
  0x15   :  { %25 = dma.hbm_to_vmem [thread:$0]  %s1718_s0, 256, %s20_s16, [#allocation3], %s1264_s26, %s1264_s26, %s1265_s27  }
  0x16   :  { %s1266_s30 = smov [#allocation5]   ;;  %s1189_s8 = scalar_lea.hbm %s1719_s1, 2048 }
  0x17   :  { %s31_s5 = sshll.u32 %s1266_s30, 4  ;;  %p1190_p8 = scmp.ne.s32.totalorder %s1719_s1, %s1189_s8  ;;  %s32_s5 = int_to_ptr.vmem [resolvable:$true] %s31_s5 }
  0x18   :  { %p1193_p9 = scmp.lt.u32.totalorder %s1189_s8, %s1719_s1 }
  0x1a   :  { %p1195_p10 = pnand %p1193_p9, %p1190_p8 }
  0x1c   :  { %1198 = shalt.err (!%p1195_p10)
}
  0x1d   :  { %s1199_s13 = scalar_lea.vmem %s32_s5, 2048  ;;  %p1204_p12 = scmp.lt.s32.totalorder %s32_s5, %s32_s5 }
  0x1e   :  { %p1200_p11 = scmp.ne.s32.totalorder %s32_s5, %s1199_s13  ;;  %p1205_p13 = scmp.lt.s32.totalorder %s1199_s13, %s1199_s13 }
  0x20   :  { %p1206_p0 = por %p1205_p13, %p1204_p12 }
  0x22   :  { %p1207_p1 = pnand %p1206_p0, %p1200_p11 }
  0x24   :  { %1210 = shalt.err (!%p1207_p1)
}
  0x25   :  { %37 = dma.hbm_to_vmem [thread:$0]  %s1719_s1, 2048, %s32_s5, [#allocation6], %s1264_s26, %s1264_s26, %s1265_s27  }
  0x26   :  { %1255 = dma.done.wait [#allocation3], 2048  }
  0x27   :  { %1256 = vsyncadd [#allocation3], 4294965248 }
  0x28   :  { %1257 = dma.done.wait [#allocation6], 2048  }
  0x29   :  { %1258 = vsyncadd [#allocation6], 4294965248  ;;  %v62_v0 = vld [vmem:[#allocation5] sm:$0xff]  ;;  %v63_v1 = vld [vmem:[#allocation5 + $0x8] sm:$0xff] }
  0x2a   :  { %v64_v2 = vld [vmem:[#allocation5 + $0x10] sm:$0xff]  ;;  %v1096_v3 = vpack.c.bf16 %v63_v1, %v62_v0  ;;  %v65_v4 = vld [vmem:[#allocation5 + $0x18] sm:$0xff]  ;;  %v66_v6 = vld [vmem:[#allocation5 + $0x20] sm:$0xff] }
  0x2b   :  { %v1100_v5 = vpack.c.bf16 %v65_v4, %v64_v2  ;;  %v67_v7 = vld [vmem:[#allocation5 + $0x28] sm:$0xff]  ;;  %v46_v8 = vld [vmem:[#allocation2] sm:$0xff]  ;;  %v68_v10 = vld [vmem:[#allocation5 + $0x30] sm:$0xff] }
  0x2c   :  { %1097 = vmatprep.subr.bf16.mxu0 %v1096_v3  ;;  %1129 = vmatprep.subr.bf16.mxu1 %v1096_v3  ;;  %v1104_v9 = vpack.c.bf16 %v67_v7, %v66_v6  ;;  %v69_v11 = vld [vmem:[#allocation5 + $0x38] sm:$0xff]  ;;  %v70_v13 = vld [vmem:[#allocation5 + $0x40] sm:$0xff]  ;;  %v71_v14 = vld [vmem:[#allocation5 + $0x48] sm:$0xff] }
  0x2d   :  { %1099 = vmatpush3.bf16.xpose.msra.mxu0 %v1096_v3  ;;  %1131 = vmatpush3.bf16.msra.mxu1 %v1096_v3  ;;  %v1108_v12 = vpack.c.bf16 %v69_v11, %v68_v10  ;;  %v1112_v15 = vpack.c.bf16 %v71_v14, %v70_v13  ;;  %v72_v16 = vld [vmem:[#allocation5 + $0x50] sm:$0xff]  ;;  %v73_v17 = vld [vmem:[#allocation5 + $0x58] sm:$0xff]  ;;  %v74_v19 = vld [vmem:[#allocation5 + $0x60] sm:$0xff] }
  0x2e   :  { %1101 = vmatprep.subr.bf16.mxu0 %v1100_v5  ;;  %1133 = vmatprep.subr.bf16.mxu1 %v1100_v5  ;;  %v1116_v18 = vpack.c.bf16 %v73_v17, %v72_v16  ;;  %v75_v20 = vld [vmem:[#allocation5 + $0x68] sm:$0xff]  ;;  %v76_v22 = vld [vmem:[#allocation5 + $0x70] sm:$0xff]  ;;  %v77_v23 = vld [vmem:[#allocation5 + $0x78] sm:$0xff] }
  0x2f   :  { %1016 = vmatprep.mubr.f32.mxu0 %v46_v8  ;;  %v1120_v21 = vpack.c.bf16 %v75_v20, %v74_v19  ;;  %v1124_v24 = vpack.c.bf16 %v77_v23, %v76_v22  ;;  %v47_v25 = vld [vmem:[#allocation2 + $0x8] sm:$0xff]  ;;  %v48_v26 = vld [vmem:[#allocation2 + $0x10] sm:$0xff]  ;;  %v49_v27 = vld [vmem:[#allocation2 + $0x18] sm:$0xff] }
  0x30   :  { %v50_v28 = vld [vmem:[#allocation2 + $0x20] sm:$0xff]  ;;  %v51_v29 = vld [vmem:[#allocation2 + $0x28] sm:$0xff]  ;;  %v52_v30 = vld [vmem:[#allocation2 + $0x30] sm:$0xff] }
  0x31   :  { %1135 = vmatpush3.bf16.msra.mxu1 %v1100_v5  ;;  %v53_v31 = vld [vmem:[#allocation2 + $0x38] sm:$0xff]  ;;  %v54_v32 = vld [vmem:[#allocation2 + $0x40] sm:$0xff]  ;;  %v55_v33 = vld [vmem:[#allocation2 + $0x48] sm:$0xff] }
  0x32   :  { %1137 = vmatprep.subr.bf16.mxu1 %v1104_v9  ;;  %v56_v34 = vld [vmem:[#allocation2 + $0x50] sm:$0xff]  ;;  %v57_v35 = vld [vmem:[#allocation2 + $0x58] sm:$0xff]  ;;  %v58_v36 = vld [vmem:[#allocation2 + $0x60] sm:$0xff] }
  0x33   :  { %v59_v37 = vld [vmem:[#allocation2 + $0x68] sm:$0xff]  ;;  %v60_v38 = vld [vmem:[#allocation2 + $0x70] sm:$0xff]  ;;  %v61_v39 = vld [vmem:[#allocation2 + $0x78] sm:$0xff] }
  0x34   :  { %v887_v40 = vld [vmem:[%s1720_s2] ss:$0 sm:$0xff] }
  0x35   :  { %1103 = vmatpush3.bf16.xpose.msra.mxu0 %v1100_v5  ;;  %1139 = vmatpush3.bf16.msra.mxu1 %v1104_v9 }
  0x36   :  { %1105 = vmatprep.subr.bf16.mxu0 %v1104_v9  ;;  %1141 = vmatprep.subr.bf16.mxu1 %v1108_v12 }
  0x39   :  { %1143 = vmatpush3.bf16.msra.mxu1 %v1108_v12 }
  0x3a   :  { %1145 = vmatprep.subr.bf16.mxu1 %v1112_v15 }
  0x3d   :  { %1107 = vmatpush3.bf16.xpose.msra.mxu0 %v1104_v9  ;;  %1147 = vmatpush3.bf16.msra.mxu1 %v1112_v15  ;;  %v246_v9 = vlaneseq }
  0x3e   :  { %1109 = vmatprep.subr.bf16.mxu0 %v1108_v12  ;;  %1149 = vmatprep.subr.bf16.mxu1 %v1116_v18 }
  0x3f   :  { %v1362_v10 = vand.u32 127, %v246_v9 }
  0x41   :  { %1151 = vmatpush3.bf16.msra.mxu1 %v1116_v18 }
  0x42   :  { %1153 = vmatprep.subr.bf16.mxu1 %v1120_v21 }
  0x45   :  { %1111 = vmatpush3.bf16.xpose.msra.mxu0 %v1108_v12  ;;  %1155 = vmatpush3.bf16.msra.mxu1 %v1120_v21 }
  0x46   :  { %1113 = vmatprep.subr.bf16.mxu0 %v1112_v15  ;;  %1157 = vmatprep.subr.bf16.mxu1 %v1124_v24 }
  0x49   :  { %1159 = vmatpush3.bf16.msra.mxu1 %v1124_v24 }
  0x4d   :  { %1115 = vmatpush3.bf16.xpose.msra.mxu0 %v1112_v15 }
  0x4e   :  { %1117 = vmatprep.subr.bf16.mxu0 %v1116_v18 }
  0x55   :  { %1119 = vmatpush3.bf16.xpose.msra.mxu0 %v1116_v18 }
  0x56   :  { %1121 = vmatprep.subr.bf16.mxu0 %v1120_v21 }
  0x5d   :  { %1123 = vmatpush3.bf16.xpose.msra.mxu0 %v1120_v21 }
  0x5e   :  { %1125 = vmatprep.subr.bf16.mxu0 %v1124_v24 }
  0x65   :  { %1127 = vmatpush3.bf16.xpose.msra.mxu0 %v1124_v24 }
  0x6c   :  { %1017 = vmatmul.mubr.f32.vlgmr.msra.gmra.mrb[0].mxu0 %v47_v25 }
  0x6d   :  { %1019 = vmatprep.mubr.f32.mxu0 %v48_v26 }
  0x70   :  { %1020 = vmatmul.mubr.f32.gmra.mrb[2].mxu0 %v49_v27 }
  0x71   :  { %1022 = vmatprep.mubr.f32.mxu0 %v50_v28 }
  0x74   :  { %1023 = vmatmul.mubr.f32.gmra.mrb[4].mxu0 %v51_v29 }
  0x75   :  { %1025 = vmatprep.mubr.f32.mxu0 %v52_v30 }
  0x78   :  { %1026 = vmatmul.mubr.f32.gmra.mrb[6].mxu0 %v53_v31 }
  0x79   :  { %1028 = vmatprep.mubr.f32.mxu0 %v54_v32 }
  0x7c   :  { %1029 = vmatmul.mubr.f32.gmra.mrb[8].mxu0 %v55_v33 }
  0x7d   :  { %1031 = vmatprep.mubr.f32.mxu0 %v56_v34 }
  0x80   :  { %1032 = vmatmul.mubr.f32.gmra.mrb[10].mxu0 %v57_v35 }
  0x81   :  { %1034 = vmatprep.mubr.f32.mxu0 %v58_v36 }
  0x84   :  { %1035 = vmatmul.mubr.f32.gmra.mrb[12].mxu0 %v59_v37 }
  0x85   :  { %1037 = vmatprep.mubr.f32.mxu0 %v60_v38 }
  0x88   :  { %1038 = vmatmul.mubr.f32.gmra.mrb[14].mxu0 %v61_v39 }
 0x13f   :  { %v1018_v41 = vpop.f32.mrb[0].mxu0 }
 0x140   :  { %v145_v42 = vpop.f32.mrb[1].mxu0  ;;  %v231_v46 = vsub.f32 %v1018_v41, %v887_v40 }
 0x141   :  { %v230_v43 = vsub.f32 %v145_v42, %v887_v40 }
 0x143   :  { %248 = vmax.xlane.f32.xlu0 %v230_v43  ;;  %v1021_v44 = vpop.f32.mrb[2].mxu0 }
 0x144   :  { %v155_v45 = vpop.f32.mrb[3].mxu0  ;;  %v233_v50 = vsub.f32 %v1021_v44, %v887_v40 }
 0x145   :  { %v232_v47 = vsub.f32 %v155_v45, %v887_v40 }
 0x147   :  { %250 = vmax.xlane.f32.xlu0 %v231_v46  ;;  %252 = vmax.xlane.f32.xlu1 %v232_v47  ;;  %v1024_v48 = vpop.f32.mrb[4].mxu0 }
 0x148   :  { %v165_v49 = vpop.f32.mrb[5].mxu0  ;;  %v1328_v54 = vsub.f32 %v1024_v48, %v887_v40 }
 0x149   :  { %v234_v51 = vsub.f32 %v165_v49, %v887_v40 }
 0x14b   :  { %254 = vmax.xlane.f32.xlu1 %v233_v50  ;;  %256 = vmax.xlane.f32.xlu0 %v234_v51  ;;  %v1027_v52 = vpop.f32.mrb[6].mxu0 }
 0x14c   :  { %v175_v53 = vpop.f32.mrb[7].mxu0  ;;  %v1334_v58 = vsub.f32 %v1027_v52, %v887_v40 }
 0x14d   :  { %v1330_v55 = vsub.f32 %v175_v53, %v887_v40 }
 0x14f   :  { %258 = vmax.xlane.f32.xlu1 %v1328_v54  ;;  %260 = vmax.xlane.f32.xlu0 %v1330_v55  ;;  %v1030_v56 = vpop.f32.mrb[8].mxu0 }
 0x150   :  { %v185_v57 = vpop.f32.mrb[9].mxu0  ;;  %v1340_v62 = vsub.f32 %v1030_v56, %v887_v40 }
 0x151   :  { %v1336_v59 = vsub.f32 %v185_v57, %v887_v40 }
 0x153   :  { %262 = vmax.xlane.f32.xlu1 %v1334_v58  ;;  %264 = vmax.xlane.f32.xlu0 %v1336_v59  ;;  %v1033_v60 = vpop.f32.mrb[10].mxu0 }
 0x154   :  { %v195_v61 = vpop.f32.mrb[11].mxu0  ;;  %v1346_v2 = vsub.f32 %v1033_v60, %v887_v40 }
 0x155   :  { %v1342_v63 = vsub.f32 %v195_v61, %v887_v40 }
 0x157   :  { %266 = vmax.xlane.f32.xlu1 %v1340_v62  ;;  %268 = vmax.xlane.f32.xlu0 %v1342_v63  ;;  %v1036_v0 = vpop.f32.mrb[12].mxu0 }
 0x158   :  { %v205_v1 = vpop.f32.mrb[13].mxu0  ;;  %v1352_v6 = vsub.f32 %v1036_v0, %v887_v40 }
 0x159   :  { %v1348_v3 = vsub.f32 %v205_v1, %v887_v40 }
 0x15b   :  { %270 = vmax.xlane.f32.xlu1 %v1346_v2  ;;  %272 = vmax.xlane.f32.xlu0 %v1348_v3  ;;  %v1039_v4 = vpop.f32.mrb[14].mxu0 }
 0x15c   :  { %v215_v5 = vpop.f32.mrb[15].mxu0  ;;  %v1358_v8 = vsub.f32 %v1039_v4, %v887_v40 }
 0x15d   :  { %v1354_v7 = vsub.f32 %v215_v5, %v887_v40 }
 0x15f   :  { %274 = vmax.xlane.f32.xlu1 %v1352_v6  ;;  %276 = vmax.xlane.f32.xlu0 %v1354_v7 }
 0x163   :  { %278 = vmax.xlane.f32.xlu1 %v1358_v8 }
 0x1d0   :  { %v249_v11 = vpop.xlane.xlu0 %248 }
 0x1d1   :  { %vm280_vm0 = vcmp.eq.f32.partialorder %v230_v43, %v249_v11 }
 0x1d2   :  { %v1365_v12 = vsel %vm280_vm0, %v1362_v10, 128 }
 0x1d3   :  { %v313_v13 = vshra.s32 %v1365_v12, 16 }
 0x1d4   :  { %v251_v14 = vpop.xlane.xlu0 %250  ;;  %v253_v15 = vpop.xlane.xlu1 %252 }
 0x1d5   :  { %vm281_vm1 = vcmp.eq.f32.partialorder %v231_v46, %v251_v14  ;;  %vm282_vm2 = vcmp.eq.f32.partialorder %v232_v47, %v253_v15  ;;  %v1368_v16 = vcvt.s32.f32 %v313_v13  ;;  %v312_v15 = vand.u32 65535, %v1365_v12 }
 0x1d6   :  { %v1371_v17 = vsel %vm281_vm1, %v1362_v10, 128  ;;  %v1374_v18 = vsel %vm282_vm2, %v1362_v10, 128 }
 0x1d7   :  { %316 = vmin.xlane.f32.xlu0 %v1368_v16  ;;  %v327_v19 = vshra.s32 %v1371_v17, 16  ;;  %v341_v20 = vshra.s32 %v1374_v18, 16 }
 0x1d8   :  { %v255_v21 = vpop.xlane.xlu1 %254  ;;  %v257_v22 = vpop.xlane.xlu0 %256 }
 0x1d9   :  { %vm283_vm3 = vcmp.eq.f32.partialorder %v233_v50, %v255_v21  ;;  %vm284_vm4 = vcmp.eq.f32.partialorder %v234_v51, %v257_v22  ;;  %v1379_v23 = vcvt.s32.f32 %v327_v19  ;;  %v1381_v24 = vcvt.s32.f32 %v341_v20 }
 0x1da   :  { %v1384_v25 = vsel %vm283_vm3, %v1362_v10, 128  ;;  %v1387_v26 = vsel %vm284_vm4, %v1362_v10, 128  ;;  %v340_v19 = vand.u32 65535, %v1374_v18  ;;  %v314_v21 = vcvt.s32.f32 %v312_v15 }
 0x1db   :  { %330 = vmin.xlane.f32.xlu1 %v1379_v23  ;;  %344 = vmin.xlane.f32.xlu0 %v1381_v24  ;;  %v355_v27 = vshra.s32 %v1384_v25, 16  ;;  %v369_v28 = vshra.s32 %v1387_v26, 16 }
 0x1dc   :  { %v259_v29 = vpop.xlane.xlu1 %258  ;;  %v261_v30 = vpop.xlane.xlu0 %260 }
 0x1dd   :  { %vm285_vm5 = vcmp.eq.f32.partialorder %v1328_v54, %v259_v29  ;;  %vm286_vm6 = vcmp.eq.f32.partialorder %v1330_v55, %v261_v30  ;;  %v1395_v31 = vcvt.s32.f32 %v355_v27  ;;  %v1397_v32 = vcvt.s32.f32 %v369_v28 }
 0x1de   :  { %v1400_v33 = vsel %vm285_vm5, %v1362_v10, 128  ;;  %v1403_v34 = vsel %vm286_vm6, %v1362_v10, 128  ;;  %v354_v27 = vand.u32 65535, %v1384_v25  ;;  %v368_v28 = vand.u32 65535, %v1387_v26 }
 0x1df   :  { %358 = vmin.xlane.f32.xlu1 %v1395_v31  ;;  %372 = vmin.xlane.f32.xlu0 %v1397_v32  ;;  %v383_v35 = vshra.s32 %v1400_v33, 16  ;;  %v397_v36 = vshra.s32 %v1403_v34, 16  ;;  %v382_v25 = vand.u32 65535, %v1400_v33  ;;  %v396_v26 = vand.u32 65535, %v1403_v34 }
 0x1e0   :  { %v263_v37 = vpop.xlane.xlu1 %262  ;;  %v265_v38 = vpop.xlane.xlu0 %264 }
 0x1e1   :  { %vm287_vm7 = vcmp.eq.f32.partialorder %v1334_v58, %v263_v37  ;;  %vm288_vm8 = vcmp.eq.f32.partialorder %v1336_v59, %v265_v38  ;;  %v1411_v39 = vcvt.s32.f32 %v383_v35  ;;  %v1413_v40 = vcvt.s32.f32 %v397_v36 }
 0x1e2   :  { %v1416_v41 = vsel %vm287_vm7, %v1362_v10, 128  ;;  %v1419_v42 = vsel %vm288_vm8, %v1362_v10, 128  ;;  %v356_v37 = vcvt.s32.f32 %v354_v27  ;;  %v370_v38 = vcvt.s32.f32 %v368_v28 }
 0x1e3   :  { %386 = vmin.xlane.f32.xlu1 %v1411_v39  ;;  %400 = vmin.xlane.f32.xlu0 %v1413_v40  ;;  %v411_v43 = vshra.s32 %v1416_v41, 16  ;;  %v425_v44 = vshra.s32 %v1419_v42, 16  ;;  %v410_v33 = vand.u32 65535, %v1416_v41  ;;  %v424_v34 = vand.u32 65535, %v1419_v42 }
 0x1e4   :  { %v267_v45 = vpop.xlane.xlu1 %266  ;;  %v269_v46 = vpop.xlane.xlu0 %268 }
 0x1e5   :  { %vm289_vm9 = vcmp.eq.f32.partialorder %v1340_v62, %v267_v45  ;;  %vm290_vm10 = vcmp.eq.f32.partialorder %v1342_v63, %v269_v46  ;;  %v1427_v47 = vcvt.s32.f32 %v411_v43  ;;  %v1429_v48 = vcvt.s32.f32 %v425_v44 }
 0x1e6   :  { %v1432_v49 = vsel %vm289_vm9, %v1362_v10, 128  ;;  %v1435_v50 = vsel %vm290_vm10, %v1362_v10, 128  ;;  %v384_v45 = vcvt.s32.f32 %v382_v25  ;;  %v398_v46 = vcvt.s32.f32 %v396_v26 }
 0x1e7   :  { %414 = vmin.xlane.f32.xlu1 %v1427_v47  ;;  %428 = vmin.xlane.f32.xlu0 %v1429_v48  ;;  %v439_v51 = vshra.s32 %v1432_v49, 16  ;;  %v453_v52 = vshra.s32 %v1435_v50, 16  ;;  %v438_v41 = vand.u32 65535, %v1432_v49  ;;  %v452_v42 = vand.u32 65535, %v1435_v50 }
 0x1e8   :  { %v271_v53 = vpop.xlane.xlu1 %270  ;;  %v273_v54 = vpop.xlane.xlu0 %272  ;;  %v1577_v26 = vshrl.u32 %v246_v9, 7 }
 0x1e9   :  { %vm291_vm11 = vcmp.eq.f32.partialorder %v1346_v2, %v271_v53  ;;  %vm292_vm12 = vcmp.eq.f32.partialorder %v1348_v3, %v273_v54  ;;  %v1443_v55 = vcvt.s32.f32 %v439_v51  ;;  %v1445_v56 = vcvt.s32.f32 %v453_v52 }
 0x1ea   :  { %v1448_v57 = vsel %vm291_vm11, %v1362_v10, 128  ;;  %v1451_v58 = vsel %vm292_vm12, %v1362_v10, 128  ;;  %v412_v53 = vcvt.s32.f32 %v410_v33  ;;  %v426_v54 = vcvt.s32.f32 %v424_v34 }
 0x1eb   :  { %442 = vmin.xlane.f32.xlu1 %v1443_v55  ;;  %456 = vmin.xlane.f32.xlu0 %v1445_v56  ;;  %v467_v59 = vshra.s32 %v1448_v57, 16  ;;  %v481_v60 = vshra.s32 %v1451_v58, 16  ;;  %v466_v49 = vand.u32 65535, %v1448_v57  ;;  %v480_v50 = vand.u32 65535, %v1451_v58 }
 0x1ec   :  { %v275_v61 = vpop.xlane.xlu1 %274  ;;  %v277_v62 = vpop.xlane.xlu0 %276  ;;  %v756_v33 = vadd.s32 4294967280, %v1362_v10 }
 0x1ed   :  { %vm293_vm13 = vcmp.eq.f32.partialorder %v1352_v6, %v275_v61  ;;  %vm294_vm14 = vcmp.eq.f32.partialorder %v1354_v7, %v277_v62  ;;  %v1459_v63 = vcvt.s32.f32 %v467_v59  ;;  %v1461_v0 = vcvt.s32.f32 %v481_v60 }
 0x1ee   :  { %v1464_v1 = vsel %vm293_vm13, %v1362_v10, 128  ;;  %v1467_v2 = vsel %vm294_vm14, %v1362_v10, 128  ;;  %v440_v61 = vcvt.s32.f32 %v438_v41  ;;  %v454_v62 = vcvt.s32.f32 %v452_v42 }
 0x1ef   :  { %470 = vmin.xlane.f32.xlu1 %v1459_v63  ;;  %484 = vmin.xlane.f32.xlu0 %v1461_v0  ;;  %v495_v3 = vshra.s32 %v1464_v1, 16  ;;  %v509_v4 = vshra.s32 %v1467_v2, 16  ;;  %v494_v57 = vand.u32 65535, %v1464_v1  ;;  %v508_v58 = vand.u32 65535, %v1467_v2 }
 0x1f0   :  { %v279_v5 = vpop.xlane.xlu1 %278 }
 0x1f1   :  { %vm295_vm15 = vcmp.eq.f32.partialorder %v1358_v8, %v279_v5  ;;  %v1474_v6 = vcvt.s32.f32 %v495_v3  ;;  %v1476_v7 = vcvt.s32.f32 %v509_v4  ;;  %v326_v8 = vand.u32 65535, %v1371_v17 }
 0x1f2   :  { %v1479_v11 = vsel %vm295_vm15, %v1362_v10, 128  ;;  %v342_v17 = vcvt.s32.f32 %v340_v19  ;;  %v468_v5 = vcvt.s32.f32 %v466_v49  ;;  %v510_v19 = vcvt.s32.f32 %v508_v58 }
 0x1f3   :  { %498 = vmin.xlane.f32.xlu1 %v1474_v6  ;;  %512 = vmin.xlane.f32.xlu0 %v1476_v7  ;;  %v523_v13 = vshra.s32 %v1479_v11, 16  ;;  %v328_v12 = vcvt.s32.f32 %v326_v8  ;;  %v522_v1 = vand.u32 65535, %v1479_v11  ;;  %v496_v8 = vcvt.s32.f32 %v494_v57 }
 0x1f4   :  { %v777_v58 = vadd.s32 4294967256, %v1362_v10 }
 0x1f5   :  { %v1484_v14 = vcvt.s32.f32 %v523_v13  ;;  %v482_v13 = vcvt.s32.f32 %v480_v50 }
 0x1f7   :  { %526 = vmin.xlane.f32.xlu1 %v1484_v14 }
 0x264   :  { %v1490_v20 = vpop.xlane.xlu0 %316 }
 0x265   :  { %vm318_vm0 = vcmp.eq.f32.partialorder %v1368_v16, %v1490_v20  ;;  %v323_v27 = vcvt.f32.s32 %v1490_v20  ;;  %v749_v20 = vadd.s32 4294967288, %v1362_v10 }
 0x266   :  { %v319_v22 = vsel %vm318_vm0, %v314_v21, inf  ;;  %vm754_vm0 = vcmask 130112  }
 0x267   :  { %320 = vmin.xlane.f32.xlu0 %v319_v22  ;;  %v524_v22 = vcvt.s32.f32 %v522_v1  ;;  %v324_v25 = vshll.u32 %v323_v27, 16  ;;  %v780_v27 = vsub.s32 %v777_v58, %v1577_v26 }
 0x268   :  { %v1496_v29 = vpop.xlane.xlu1 %330  ;;  %v1498_v30 = vpop.xlane.xlu0 %344 }
 0x269   :  { %vm332_vm1 = vcmp.eq.f32.partialorder %v1379_v23, %v1496_v29  ;;  %vm346_vm2 = vcmp.eq.f32.partialorder %v1381_v24, %v1498_v30  ;;  %v337_v28 = vcvt.f32.s32 %v1496_v29 }
 0x26a   :  { %v333_v18 = vsel %vm332_vm1, %v328_v12, inf  ;;  %v347_v16 = vsel %vm346_vm2, %v342_v17, inf  ;;  %vm761_vm2 = vcmask 195712  }
 0x26b   :  { %334 = vmin.xlane.f32.xlu1 %v333_v18  ;;  %348 = vmin.xlane.f32.xlu0 %v347_v16  ;;  %v338_v29 = vshll.u32 %v337_v28, 16 }
 0x26c   :  { %v1506_v35 = vpop.xlane.xlu1 %358  ;;  %v1508_v36 = vpop.xlane.xlu0 %372 }
 0x26d   :  { %vm360_vm3 = vcmp.eq.f32.partialorder %v1395_v31, %v1506_v35  ;;  %vm374_vm4 = vcmp.eq.f32.partialorder %v1397_v32, %v1508_v36  ;;  %v379_v12 = vcvt.f32.s32 %v1508_v36 }
 0x26e   :  { %v361_v23 = vsel %vm360_vm3, %v356_v37, inf  ;;  %v375_v24 = vsel %vm374_vm4, %v370_v38, inf  ;;  %vm768_vm3 = vcmask 261312   ;;  %vm775_vm4 = vcmask 326912  }
 0x26f   :  { %362 = vmin.xlane.f32.xlu1 %v361_v23  ;;  %376 = vmin.xlane.f32.xlu0 %v375_v24  ;;  %v380_v36 = vshll.u32 %v379_v12, 16 }
 0x270   :  { %v1516_v43 = vpop.xlane.xlu1 %386  ;;  %v1518_v44 = vpop.xlane.xlu0 %400 }
 0x271   :  { %vm388_vm5 = vcmp.eq.f32.partialorder %v1411_v39, %v1516_v43  ;;  %vm402_vm6 = vcmp.eq.f32.partialorder %v1413_v40, %v1518_v44  ;;  %v393_v17 = vcvt.f32.s32 %v1516_v43  ;;  %v407_v18 = vcvt.f32.s32 %v1518_v44 }
 0x272   :  { %v389_v31 = vsel %vm388_vm5, %v384_v45, inf  ;;  %v403_v32 = vsel %vm402_vm6, %v398_v46, inf }
 0x273   :  { %390 = vmin.xlane.f32.xlu1 %v389_v31  ;;  %404 = vmin.xlane.f32.xlu0 %v403_v32  ;;  %v1581_v38 = vshll.u32 %v393_v17, 16  ;;  %v1585_v34 = vshll.u32 %v407_v18, 16  ;;  %v752_v31 = vsub.s32 %v749_v20, %v1577_v26  ;;  %v747_v32 = vsub.s32 %v1362_v10, %v1577_v26 }
 0x274   :  { %v1526_v51 = vpop.xlane.xlu1 %414  ;;  %v1528_v52 = vpop.xlane.xlu0 %428  ;;  %v791_v17 = vadd.s32 4294967240, %v1362_v10  ;;  %v798_v18 = vadd.s32 4294967232, %v1362_v10 }
 0x275   :  { %vm416_vm7 = vcmp.eq.f32.partialorder %v1427_v47, %v1526_v51  ;;  %vm430_vm8 = vcmp.eq.f32.partialorder %v1429_v48, %v1528_v52  ;;  %v421_v16 = vcvt.f32.s32 %v1526_v51  ;;  %v763_v51 = vadd.s32 4294967272, %v1362_v10 }
 0x276   :  { %v417_v39 = vsel %vm416_vm7, %v412_v53, inf  ;;  %v431_v40 = vsel %vm430_vm8, %v426_v54, inf  ;;  %v759_v54 = vsub.s32 %v756_v33, %v1577_v26  ;;  %vm782_vm7 = vcmask 392512  }
 0x277   :  { %418 = vmin.xlane.f32.xlu1 %v417_v39  ;;  %432 = vmin.xlane.f32.xlu0 %v431_v40  ;;  %v1587_v43 = vshll.u32 %v421_v16, 16  ;;  %v770_v40 = vadd.s32 4294967264, %v1362_v10  ;;  %v766_v57 = vsub.s32 %v763_v51, %v1577_v26  ;;  %vm789_vm8 = vcmask 458112  }
 0x278   :  { %v1536_v59 = vpop.xlane.xlu1 %442  ;;  %v1538_v60 = vpop.xlane.xlu0 %456  ;;  %v801_v33 = vsub.s32 %v798_v18, %v1577_v26 }
 0x279   :  { %vm444_vm9 = vcmp.eq.f32.partialorder %v1443_v55, %v1536_v59  ;;  %vm458_vm10 = vcmp.eq.f32.partialorder %v1445_v56, %v1538_v60  ;;  %v463_v23 = vcvt.f32.s32 %v1538_v60 }
 0x27a   :  { %v445_v47 = vsel %vm444_vm9, %v440_v61, inf  ;;  %v459_v48 = vsel %vm458_vm10, %v454_v62, inf  ;;  %v1267_v62 = vmov 1.0  }
 0x27b   :  { %446 = vmin.xlane.f32.xlu1 %v445_v47  ;;  %460 = vmin.xlane.f32.xlu0 %v459_v48 }
 0x27c   :  { %v1546_v3 = vpop.xlane.xlu1 %470  ;;  %v1548_v4 = vpop.xlane.xlu0 %484 }
 0x27d   :  { %vm472_vm11 = vcmp.eq.f32.partialorder %v1459_v63, %v1546_v3  ;;  %vm486_vm12 = vcmp.eq.f32.partialorder %v1461_v0, %v1548_v4  ;;  %v477_v9 = vcvt.f32.s32 %v1546_v3  ;;  %v491_v46 = vcvt.f32.s32 %v1548_v4 }
 0x27e   :  { %v473_v55 = vsel %vm472_vm11, %v468_v5, inf  ;;  %v487_v56 = vsel %vm486_vm12, %v482_v13, inf  ;;  %v773_v13 = vsub.s32 %v770_v40, %v1577_v26  ;;  %vm796_vm11 = vcmask 523712  }
 0x27f   :  { %474 = vmin.xlane.f32.xlu1 %v473_v55  ;;  %488 = vmin.xlane.f32.xlu0 %v487_v56  ;;  %v1603_v49 = vshll.u32 %v477_v9, 16  ;;  %v1606_v60 = vshll.u32 %v491_v46, 16  ;;  %v784_v56 = vadd.s32 4294967248, %v1362_v10  ;;  %vm803_vm12 = vcmask 589312  }
 0x280   :  { %v1555_v15 = vpop.xlane.xlu1 %498  ;;  %v1557_v2 = vpop.xlane.xlu0 %512 }
 0x281   :  { %vm500_vm13 = vcmp.eq.f32.partialorder %v1474_v6, %v1555_v15  ;;  %vm514_vm14 = vcmp.eq.f32.partialorder %v1476_v7, %v1557_v2  ;;  %v351_v6 = vcvt.f32.s32 %v1498_v30  ;;  %v365_v7 = vcvt.f32.s32 %v1506_v35 }
 0x282   :  { %v501_v63 = vsel %vm500_vm13, %v496_v8, inf  ;;  %v515_v0 = vsel %vm514_vm14, %v510_v19, inf  ;;  %v449_v35 = vcvt.f32.s32 %v1536_v59  ;;  %v505_v61 = vcvt.f32.s32 %v1555_v15 }
 0x283   :  { %502 = vmin.xlane.f32.xlu1 %v501_v63  ;;  %516 = vmin.xlane.f32.xlu0 %v515_v0  ;;  %v352_v30 = vshll.u32 %v351_v6, 16  ;;  %v366_v37 = vshll.u32 %v365_v7, 16  ;;  %v519_v3 = vcvt.f32.s32 %v1557_v2  ;;  %v787_v7 = vsub.s32 %v784_v56, %v1577_v26 }
 0x284   :  { %v1563_v21 = vpop.xlane.xlu1 %526  ;;  %v1596_v41 = vshll.u32 %v449_v35, 16  ;;  %v1615_v63 = vshll.u32 %v505_v61, 16  ;;  %v805_v35 = vadd.s32 4294967224, %v1362_v10  ;;  %v826_v61 = vadd.s32 4294967200, %v1362_v10 }
 0x285   :  { %vm528_vm15 = vcmp.eq.f32.partialorder %v1484_v14, %v1563_v21  ;;  %v435_v14 = vcvt.f32.s32 %v1528_v52  ;;  %v1599_v52 = vshll.u32 %v463_v23, 16  ;;  %v794_v23 = vsub.s32 %v791_v17, %v1577_v26 }
 0x286   :  { %v529_v11 = vsel %vm528_vm15, %v524_v22, inf  ;;  %vm810_vm15 = vcmask 654912  }
 0x287   :  { %530 = vmin.xlane.f32.xlu1 %v529_v11  ;;  %v1590_v45 = vshll.u32 %v435_v14, 16 }
 0x2f4   :  { %v321_v24 = vpop.xlane.xlu0 %320 }
 0x2f5   :  { %v322_v44 = vcvt.f32.s32 %v321_v24 }
 0x2f7   :  { %v325_v42 = vadd.s32 %v324_v25, %v322_v44  ;;  %v812_v44 = vadd.s32 4294967216, %v1362_v10 }
 0x2f8   :  { %v335_v53 = vpop.xlane.xlu1 %334  ;;  %v349_v39 = vpop.xlane.xlu0 %348 }
 0x2f9   :  { %v336_v50 = vcvt.f32.s32 %v335_v53  ;;  %v350_v59 = vcvt.f32.s32 %v349_v39  ;;  %vm536_vm1 = vcmp.eq.s32.totalorder %v1362_v10, %v325_v42  ;;  %v748_v4 = vrot.slane %v325_v42, %v747_v32 }
 0x2fa   :  { %1072 = vmatprep.mubr.msk.f32.mxu1 %vm536_vm1, %v1267_v62  ;;  %v808_v53 = vsub.s32 %v805_v35, %v1577_v26  ;;  %v815_v40 = vsub.s32 %v812_v44, %v1577_v26 }
 0x2fb   :  { %v339_v47 = vadd.s32 %v338_v29, %v336_v50  ;;  %v353_v48 = vadd.s32 %v352_v30, %v350_v59  ;;  %v819_v59 = vadd.s32 4294967208, %v1362_v10 }
 0x2fc   :  { %v363_v5 = vpop.xlane.xlu1 %362  ;;  %v377_v55 = vpop.xlane.xlu0 %376 }
 0x2fd   :  { %v753_v1 = vrot.slane %v339_v47, %v752_v31  ;;  %v760_v15 = vrot.slane %v353_v48, %v759_v54  ;;  %v364_v8 = vcvt.f32.s32 %v363_v5  ;;  %v378_v19 = vcvt.f32.s32 %v377_v55 }
 0x2fe   :  { %vm537_vm5 = vcmp.eq.s32.totalorder %v1362_v10, %v339_v47  ;;  %vm538_vm6 = vcmp.eq.s32.totalorder %v1362_v10, %v353_v48  ;;  %v822_v2 = vsub.s32 %v819_v59, %v1577_v26  ;;  %v829_v55 = vsub.s32 %v826_v61, %v1577_v26 }
 0x2ff   :  { %v755_v0 = vsel %vm754_vm0, %v753_v1, %v748_v4  ;;  %v367_v22 = vadd.s32 %v366_v37, %v364_v8  ;;  %v381_v11 = vadd.s32 %v380_v36, %v378_v19  ;;  %1073 = vmatmul.mubr.msk.f32.vlgmr.msra.gmra.mrb[0].mxu1 %vm537_vm5, %v1267_v62  ;;  %v833_v1 = vadd.s32 4294967192, %v1362_v10 }
 0x300   :  { %v762_v28 = vsel %vm761_vm2, %v760_v15, %v755_v0  ;;  %1075 = vmatprep.mubr.msk.f32.mxu1 %vm538_vm6, %v1267_v62  ;;  %v391_v6 = vpop.xlane.xlu1 %390  ;;  %v405_v12 = vpop.xlane.xlu0 %404  ;;  %vm817_vm2 = vcmask 720512   ;;  %v840_v0 = vadd.s32 4294967184, %v1362_v10  ;;  %vm824_vm5 = vcmask 786112  }
 0x301   :  { %v767_v16 = vrot.slane %v367_v22, %v766_v57  ;;  %v774_v25 = vrot.slane %v381_v11, %v773_v13  ;;  %v392_v14 = vcvt.f32.s32 %v391_v6  ;;  %v406_v20 = vcvt.f32.s32 %v405_v12 }
 0x302   :  { %vm539_vm9 = vcmp.eq.s32.totalorder %v1362_v10, %v367_v22  ;;  %vm540_vm10 = vcmp.eq.s32.totalorder %v1362_v10, %v381_v11  ;;  %v520_v57 = vshll.u32 %v519_v3, 16  ;;  %vm831_vm6 = vcmask 851712  }
 0x303   :  { %v769_v29 = vsel %vm768_vm3, %v767_v16, %v762_v28  ;;  %v395_v30 = vadd.s32 %v1581_v38, %v392_v14  ;;  %v409_v37 = vadd.s32 %v1585_v34, %v406_v20  ;;  %1076 = vmatmul.mubr.msk.f32.gmra.mrb[2].mxu1 %vm539_vm9, %v1267_v62  ;;  %v847_v12 = vadd.s32 4294967176, %v1362_v10 }
 0x304   :  { %v776_v36 = vsel %vm775_vm4, %v774_v25, %v769_v29  ;;  %1078 = vmatprep.mubr.msk.f32.mxu1 %vm540_vm10, %v1267_v62  ;;  %v419_v24 = vpop.xlane.xlu1 %418  ;;  %v433_v9 = vpop.xlane.xlu0 %432  ;;  %vm838_vm9 = vcmask 917312  }
 0x305   :  { %v781_v46 = vrot.slane %v395_v30, %v780_v27  ;;  %v788_v38 = vrot.slane %v409_v37, %v787_v7  ;;  %v420_v31 = vcvt.f32.s32 %v419_v24  ;;  %v434_v34 = vcvt.f32.s32 %v433_v9 }
 0x306   :  { %vm541_vm13 = vcmp.eq.s32.totalorder %v1362_v10, %v395_v30  ;;  %vm542_vm14 = vcmp.eq.s32.totalorder %v1362_v10, %v409_v37 }
 0x307   :  { %v783_v32 = vsel %vm782_vm7, %v781_v46, %v776_v36  ;;  %v423_v42 = vadd.s32 %v1587_v43, %v420_v31  ;;  %v437_v51 = vadd.s32 %v1590_v45, %v434_v34  ;;  %1079 = vmatmul.mubr.msk.f32.gmra.mrb[4].mxu1 %vm541_vm13, %v1267_v62  ;;  %v850_v36 = vsub.s32 %v847_v12, %v1577_v26 }
 0x308   :  { %v790_v54 = vsel %vm789_vm8, %v788_v38, %v783_v32  ;;  %1081 = vmatprep.mubr.msk.f32.mxu1 %vm542_vm14, %v1267_v62  ;;  %v447_v39 = vpop.xlane.xlu1 %446  ;;  %v461_v50 = vpop.xlane.xlu0 %460  ;;  %vm852_vm13 = vcmask 1048512  }
 0x309   :  { %v795_v47 = vrot.slane %v423_v42, %v794_v23  ;;  %v802_v43 = vrot.slane %v437_v51, %v801_v33  ;;  %v448_v48 = vcvt.f32.s32 %v447_v39  ;;  %v462_v45 = vcvt.f32.s32 %v461_v50 }
 0x30a   :  { %vm543_vm0 = vcmp.eq.s32.totalorder %v1362_v10, %v423_v42  ;;  %vm544_vm1 = vcmp.eq.s32.totalorder %v1362_v10, %v437_v51 }
 0x30b   :  { %v797_v58 = vsel %vm796_vm11, %v795_v47, %v790_v54  ;;  %v451_v4 = vadd.s32 %v1596_v41, %v448_v48  ;;  %v465_v5 = vadd.s32 %v1599_v52, %v462_v45  ;;  %1082 = vmatmul.mubr.msk.f32.gmra.mrb[6].mxu1 %vm543_vm0, %v1267_v62  ;;  %v533_v52 = vcvt.f32.s32 %v1563_v21 }
 0x30c   :  { %v804_v13 = vsel %vm803_vm12, %v802_v43, %v797_v58  ;;  %1084 = vmatprep.mubr.msk.f32.mxu1 %vm544_vm1, %v1267_v62  ;;  %v475_v3 = vpop.xlane.xlu1 %474  ;;  %v489_v56 = vpop.xlane.xlu0 %488  ;;  %v836_v21 = vsub.s32 %v833_v1, %v1577_v26  ;;  %vm845_vm12 = vcmask 982912  }
 0x30d   :  { %v809_v15 = vrot.slane %v451_v4, %v808_v53  ;;  %v816_v8 = vrot.slane %v465_v5, %v815_v40  ;;  %v476_v41 = vcvt.f32.s32 %v475_v3  ;;  %v490_v19 = vcvt.f32.s32 %v489_v56 }
 0x30e   :  { %vm545_vm3 = vcmp.eq.s32.totalorder %v1362_v10, %v451_v4  ;;  %vm546_vm4 = vcmp.eq.s32.totalorder %v1362_v10, %v465_v5  ;;  %v534_v29 = vshll.u32 %v533_v52, 16 }
 0x30f   :  { %v811_v22 = vsel %vm810_vm15, %v809_v15, %v804_v13  ;;  %v479_v11 = vadd.s32 %v1603_v49, %v476_v41  ;;  %v493_v27 = vadd.s32 %v1606_v60, %v490_v19  ;;  %1085 = vmatmul.mubr.msk.f32.gmra.mrb[8].mxu1 %vm545_vm3, %v1267_v62  ;;  %v843_v49 = vsub.s32 %v840_v0, %v1577_v26 }
 0x310   :  { %v818_v28 = vsel %vm817_vm2, %v816_v8, %v811_v22  ;;  %1087 = vmatprep.mubr.msk.f32.mxu1 %vm546_vm4, %v1267_v62  ;;  %v503_v6 = vpop.xlane.xlu1 %502  ;;  %v517_v7 = vpop.xlane.xlu0 %516 }
 0x311   :  { %v823_v17 = vrot.slane %v479_v11, %v822_v2  ;;  %v830_v18 = vrot.slane %v493_v27, %v829_v55  ;;  %v504_v16 = vcvt.f32.s32 %v503_v6  ;;  %v518_v25 = vcvt.f32.s32 %v517_v7 }
 0x312   :  { %vm547_vm7 = vcmp.eq.s32.totalorder %v1362_v10, %v479_v11  ;;  %vm548_vm8 = vcmp.eq.s32.totalorder %v1362_v10, %v493_v27 }
 0x313   :  { %v825_v60 = vsel %vm824_vm5, %v823_v17, %v818_v28  ;;  %v507_v14 = vadd.s32 %v1615_v63, %v504_v16  ;;  %v521_v20 = vadd.s32 %v520_v57, %v518_v25  ;;  %1088 = vmatmul.mubr.msk.f32.gmra.mrb[10].mxu1 %vm547_vm7, %v1267_v62 }
 0x314   :  { %v832_v30 = vsel %vm831_vm6, %v830_v18, %v825_v60  ;;  %1090 = vmatprep.mubr.msk.f32.mxu1 %vm548_vm8, %v1267_v62  ;;  %v531_v37 = vpop.xlane.xlu1 %530 }
 0x315   :  { %v837_v35 = vrot.slane %v507_v14, %v836_v21  ;;  %v532_v23 = vcvt.f32.s32 %v531_v37  ;;  %vm549_vm10 = vcmp.eq.s32.totalorder %v1362_v10, %v507_v14  ;;  %v844_v24 = vrot.slane %v521_v20, %v843_v49 }
 0x316   :  { %vm550_vm11 = vcmp.eq.s32.totalorder %v1362_v10, %v521_v20 }
 0x317   :  { %v839_v63 = vsel %vm838_vm9, %v837_v35, %v832_v30  ;;  %v535_v33 = vadd.s32 %v534_v29, %v532_v23  ;;  %1091 = vmatmul.mubr.msk.f32.gmra.mrb[12].mxu1 %vm549_vm10, %v1267_v62 }
 0x318   :  { %1093 = vmatprep.mubr.msk.f32.mxu1 %vm550_vm11, %v1267_v62  ;;  %v846_v44 = vsel %vm845_vm12, %v844_v24, %v839_v63 }
 0x319   :  { %v851_v9 = vrot.slane %v535_v33, %v850_v36  ;;  %vm551_vm14 = vcmp.eq.s32.totalorder %v1362_v10, %v535_v33 }
 0x31b   :  { %v853_v46 = vsel %vm852_vm13, %v851_v9, %v846_v44  ;;  %1094 = vmatmul.mubr.msk.f32.gmra.mrb[14].mxu1 %vm551_vm14, %v1267_v62 }
 0x31c   :  { %854 = vst [vmem:[#allocation8] sm:$0x1] %v853_v46 }
 0x3d2   :  { %v1074_v26 = vpop.f32.mrb[0].mxu1 }
 0x3d3   :  { %730 = vst [vmem:[#allocation7 + $0x8] sm:$0xff] %v1074_v26  ;;  %v650_v38 = vpop.f32.mrb[1].mxu1 }
 0x3d4   :  { %729 = vst [vmem:[#allocation7] sm:$0xff] %v650_v38 }
 0x3d6   :  { %v1077_v31 = vpop.f32.mrb[2].mxu1 }
 0x3d7   :  { %732 = vst [vmem:[#allocation7 + $0x18] sm:$0xff] %v1077_v31  ;;  %v660_v34 = vpop.f32.mrb[3].mxu1 }
 0x3d8   :  { %731 = vst [vmem:[#allocation7 + $0x10] sm:$0xff] %v660_v34 }
 0x3da   :  { %v1080_v32 = vpop.f32.mrb[4].mxu1 }
 0x3db   :  { %734 = vst [vmem:[#allocation7 + $0x28] sm:$0xff] %v1080_v32  ;;  %v670_v42 = vpop.f32.mrb[5].mxu1 }
 0x3dc   :  { %733 = vst [vmem:[#allocation7 + $0x20] sm:$0xff] %v670_v42 }
 0x3de   :  { %v1083_v51 = vpop.f32.mrb[6].mxu1 }
 0x3df   :  { %736 = vst [vmem:[#allocation7 + $0x38] sm:$0xff] %v1083_v51  ;;  %v680_v10 = vpop.f32.mrb[7].mxu1 }
 0x3e0   :  { %735 = vst [vmem:[#allocation7 + $0x30] sm:$0xff] %v680_v10 }
 0x3e2   :  { %v1086_v53 = vpop.f32.mrb[8].mxu1 }
 0x3e3   :  { %738 = vst [vmem:[#allocation7 + $0x48] sm:$0xff] %v1086_v53  ;;  %v690_v62 = vpop.f32.mrb[9].mxu1 }
 0x3e4   :  { %737 = vst [vmem:[#allocation7 + $0x40] sm:$0xff] %v690_v62 }
 0x3e6   :  { %v1089_v54 = vpop.f32.mrb[10].mxu1 }
 0x3e7   :  { %740 = vst [vmem:[#allocation7 + $0x58] sm:$0xff] %v1089_v54  ;;  %v700_v39 = vpop.f32.mrb[11].mxu1 }
 0x3e8   :  { %739 = vst [vmem:[#allocation7 + $0x50] sm:$0xff] %v700_v39 }
 0x3ea   :  { %v1092_v40 = vpop.f32.mrb[12].mxu1 }
 0x3eb   :  { %742 = vst [vmem:[#allocation7 + $0x68] sm:$0xff] %v1092_v40  ;;  %v710_v50 = vpop.f32.mrb[13].mxu1 }
 0x3ec   :  { %741 = vst [vmem:[#allocation7 + $0x60] sm:$0xff] %v710_v50 }
 0x3ee   :  { %v1095_v59 = vpop.f32.mrb[14].mxu1 }
 0x3ef   :  { %744 = vst [vmem:[#allocation7 + $0x78] sm:$0xff] %v1095_v59  ;;  %v720_v61 = vpop.f32.mrb[15].mxu1 }
 0x3f0   :  { %743 = vst [vmem:[#allocation7 + $0x70] sm:$0xff] %v720_v61 }
 0x3f1   :  { %859 = vsyncadd [#allocation4], 1792  ;;  %s1268_s2 = smov [#allocation7]   ;;  %s1269_s17 = smov [#allocation8]  }
 0x3f2   :  { %s860_s16 = sshll.u32 %s1268_s2, 4  ;;  %s873_s18 = sshll.u32 %s1269_s17, 4  ;;  %s861_s16 = int_to_ptr.vmem [resolvable:$true] %s860_s16  ;;  %s874_s18 = int_to_ptr.vmem [resolvable:$true] %s873_s18 }
 0x3f3   :  { %s1211_s19 = scalar_lea.vmem %s861_s16, 256  ;;  %s1215_s20 = scalar_lea.vmem %s861_s16, 2048 }
 0x3f4   :  { %p1212_p2 = scmp.ne.s32.totalorder %s861_s16, %s1211_s19  ;;  %p1216_p3 = scmp.lt.s32.totalorder %s861_s16, %s861_s16 }
 0x3f5   :  { %p1217_p4 = scmp.lt.s32.totalorder %s1215_s20, %s1211_s19 }
 0x3f7   :  { %p1218_p5 = por %p1217_p4, %p1216_p3 }
 0x3f9   :  { %p1219_p6 = pnand %p1218_p5, %p1212_p2 }
 0x3fb   :  { %1222 = shalt.err (!%p1219_p6)
}
 0x3fc   :  { %s1223_s23 = scalar_lea.hbm %s1721_s3, 256 }
 0x3fd   :  { %p1224_p7 = scmp.ne.s32.totalorder %s1721_s3, %s1223_s23  ;;  %p1227_p8 = scmp.lt.u32.totalorder %s1223_s23, %s1721_s3 }
 0x3ff   :  { %p1229_p9 = pnand %p1227_p8, %p1224_p7 }
 0x401   :  { %1232 = shalt.err (!%p1229_p9)
}
 0x402   :  { %866 = dma.vmem_to_hbm [thread:$0]  %s861_s16, 256, %s1721_s3, [#allocation4], %s1264_s26, %s1264_s26, %s1265_s27  }
 0x403   :  { %s1233_s6 = scalar_lea.vmem %s874_s18, 16  ;;  %s1237_s7 = scalar_lea.vmem %s874_s18, 32 }
 0x404   :  { %p1234_p10 = scmp.ne.s32.totalorder %s874_s18, %s1233_s6  ;;  %p1238_p11 = scmp.lt.s32.totalorder %s874_s18, %s874_s18 }
 0x405   :  { %p1239_p12 = scmp.lt.s32.totalorder %s1237_s7, %s1233_s6 }
 0x407   :  { %p1240_p13 = por %p1239_p12, %p1238_p11 }
 0x409   :  { %p1241_p0 = pnand %p1240_p13, %p1234_p10 }
 0x40b   :  { %1244 = shalt.err (!%p1241_p0)
}
 0x40c   :  { %s1245_s10 = scalar_lea.hbm %s1722_s4, 16 }
 0x40d   :  { %p1246_p1 = scmp.ne.s32.totalorder %s1722_s4, %s1245_s10  ;;  %p1249_p2 = scmp.lt.u32.totalorder %s1245_s10, %s1722_s4 }
 0x40f   :  { %p1251_p3 = pnand %p1249_p2, %p1246_p1 }
 0x411   :  { %1254 = shalt.err (!%p1251_p3)
}
 0x412   :  { %876 = dma.vmem_to_hbm [thread:$0]  %s874_s18, 16, %s1722_s4, [#allocation9]  }
 0x413   :  { %1259 = dma.done.wait [#allocation4], 2048  }
 0x414   :  { %1260 = vsyncadd [#allocation4], 4294965248 }
 0x415   :  { %1261 = dma.done.wait [#allocation9], 16  }
 0x416   :  { %1262 = vsyncadd [#allocation9], 4294967280 }
 0x417   :  { %883 = vsyncpa [#allocation3], 1 }
 0x418   :  { %884 = vsyncpa [#allocation6], 1 }
 0x419   :  { %885 = vsyncpa [#allocation4], 1 }
 0x41a   :  { %886 = vsyncpa [#allocation9], 1 }

</bundles_post_ra>
